<compile_context>
chip_gen: v6e
topology: v6e:2x2x1
jax: 0.10.0
libtpu: 0.0.40
codegen_flags: <defaults>
</compile_context>

<pallas_src>
import math
from functools import partial

import jax
import jax.numpy as jnp
from jax.experimental import pallas as pl
from jax.experimental.pallas import tpu as pltpu

LANE = 128


def _round_up(x, m):
    return ((x + m - 1) // m) * m


def _cdiv(a, b):
    return -(-a // b)


def _pick_tile(m, target=256):
    """Row-tile size: up to `target`, multiple of 8, and >= 2 grid steps."""
    if m >= 2 * target:
        return target
    return max(8, _round_up(_cdiv(m, 2), 8))


# ----------------------------------------------------------------------------
# Pallas kernels
# ----------------------------------------------------------------------------
def _mm_bias_act_kernel(x_ref, w_ref, b_ref, o_ref, *, act):
    # bf16 operands on the MXU, f32 accumulation + epilogue.
    acc = jnp.dot(x_ref[...], w_ref[...], preferred_element_type=jnp.float32)
    acc = acc + b_ref[...]
    if act:
        acc = acc * jax.nn.sigmoid(acc)        # SiLU
    o_ref[...] = acc.astype(o_ref.dtype)


def _grouped_conv_kernel(x_ref, w_ref, b_ref, o_ref):
    # x_ref: (9, tm, cw_in) taps, w_ref: (9, cw_in, cw_out) per-chunk weights.
    acc = jnp.dot(x_ref[0], w_ref[0], preferred_element_type=jnp.float32)
    for t in range(1, 9):
        acc = acc + jnp.dot(x_ref[t], w_ref[t], preferred_element_type=jnp.float32)
    acc = acc + b_ref[0]
    acc = acc * jax.nn.sigmoid(acc)            # SiLU
    o_ref[...] = acc.astype(o_ref.dtype)


def _conv_c_kernel(x_ref, s_ref, w_ref, b_ref, o_ref):
    xs = x_ref[0] * s_ref[0]                   # SE prescale fused (bf16)
    acc = jnp.dot(xs, w_ref[...], preferred_element_type=jnp.float32)
    acc = acc + b_ref[...]
    o_ref[0] = acc.astype(o_ref.dtype)


def _conv_c_res_kernel(x_ref, s_ref, w_ref, b_ref, r_ref, o_ref):
    xs = x_ref[0] * s_ref[0]
    acc = jnp.dot(xs, w_ref[...], preferred_element_type=jnp.float32)
    acc = acc + b_ref[...]
    acc = acc + r_ref[0].astype(jnp.float32)   # residual shortcut
    o_ref[0] = acc.astype(o_ref.dtype)


# ----------------------------------------------------------------------------
# Kernel wrappers
# ----------------------------------------------------------------------------
def matmul_bias_act(x, w, b, *, act, out_dtype=jnp.bfloat16, tm_target=256):
    """(M,K)@(K,N) + bias [+SiLU], tiled over M, lane-dense N (128-multiple)."""
    M, K = x.shape
    N = w.shape[1]
    tm = _pick_tile(M, tm_target)
    Mp = _round_up(M, tm)
    if Mp != M:
        x = jnp.pad(x, ((0, Mp - M), (0, 0)))
    grid = (Mp // tm,)
    cost = pl.CostEstimate(
        flops=int(2 * Mp * K * N),
        transcendentals=int(Mp * N if act else 0),
        bytes_accessed=int(Mp * K * 2 + K * N * 2 + N * 4 + Mp * N * 2),
    )
    out = pl.pallas_call(
        partial(_mm_bias_act_kernel, act=act),
        out_shape=jax.ShapeDtypeStruct((Mp, N), out_dtype),
        grid=grid,
        in_specs=[
            pl.BlockSpec((tm, K), lambda i: (i, 0)),
            pl.BlockSpec((K, N), lambda i: (0, 0)),
            pl.BlockSpec((1, N), lambda i: (0, 0)),
        ],
        out_specs=pl.BlockSpec((tm, N), lambda i: (i, 0)),
        compiler_params=pltpu.CompilerParams(dimension_semantics=("parallel",)),
        cost_estimate=cost,
    )(x, w, b)
    return out[:M] if Mp != M else out


def grouped_conv3x3(h1, w_chunks, b_chunks, stride, meta, *, out_dtype=jnp.bfloat16,
                    tm_target=256):
    """3x3 grouped conv (+folded BN, +SiLU) as group-chunked matmuls.

    h1: (N, H, W, C_b_in) bf16 (group-padded channels).  Returns the output in
    "chunk layout" (M, n_chunks * cw_out) plus the output spatial size.
    """
    n, h, w, c_in_tot = h1.shape
    nc, cw_in, cw_out = meta["n_chunks"], meta["cw_in"], meta["cw_out"]
    sh, sw = stride
    ho = (h + 2 - 3) // sh + 1
    wo = (w + 2 - 3) // sw + 1

    # im2col taps, tap-major so the kernel can index taps along the leading dim
    # without relayout.  Emitted in bf16 (halves the dominant HBM traffic).
    xp = jnp.pad(h1, ((0, 0), (1, 1), (1, 1), (0, 0)))
    taps = [xp[:, ky:ky + sh * (ho - 1) + 1:sh, kx:kx + sw * (wo - 1) + 1:sw, :]
            for ky in range(3) for kx in range(3)]
    patches = jnp.stack(taps, axis=0).reshape(9, n * ho * wo, c_in_tot)
    patches = patches.astype(jnp.bfloat16)

    M = n * ho * wo
    tm = _pick_tile(M, tm_target)
    Mp = _round_up(M, tm)
    if Mp != M:
        patches = jnp.pad(patches, ((0, 0), (0, Mp - M), (0, 0)))

    grid = (nc, Mp // tm)   # weight block (chunk) outer -> stays VMEM-resident
    cost = pl.CostEstimate(
        flops=int(2 * Mp * 9 * cw_in * cw_out * nc),
        transcendentals=int(Mp * cw_out * nc),
        bytes_accessed=int(9 * Mp * c_in_tot * 2 + nc * 9 * cw_in * cw_out * 2
                           + nc * cw_out * 4 + Mp * nc * cw_out * 2),
    )
    out = pl.pallas_call(
        _grouped_conv_kernel,
        out_shape=jax.ShapeDtypeStruct((Mp, nc * cw_out), out_dtype),
        grid=grid,
        in_specs=[
            pl.BlockSpec((9, tm, cw_in), lambda c, i: (0, i, c)),
            pl.BlockSpec((9, cw_in, cw_out), lambda c, i: (c, 0, 0)),
            pl.BlockSpec((1, 1, cw_out), lambda c, i: (c, 0, 0)),
        ],
        out_specs=pl.BlockSpec((tm, cw_out), lambda c, i: (i, c)),
        compiler_params=pltpu.CompilerParams(
            dimension_semantics=("parallel", "parallel")),
        cost_estimate=cost,
    )(patches, w_chunks, b_chunks)
    out = out[:M] if Mp != M else out
    return out, (ho, wo)


def conv_c_se(x3, s3, w, b, residual=None, *, out_dtype=jnp.bfloat16, thw_target=256):
    """1x1 conv (+folded BN) with fused SE prescale and optional residual.

    x3: (N, HW, K) bf16, s3: (N, 1, K) bf16 SE scale, residual: (N, HW, Cout).
    """
    n, hw, k = x3.shape
    cout = w.shape[1]
    thw = _pick_tile(hw, thw_target)
    hwp = _round_up(hw, thw)
    if hwp != hw:
        x3 = jnp.pad(x3, ((0, 0), (0, hwp - hw), (0, 0)))
        if residual is not None:
            residual = jnp.pad(residual, ((0, 0), (0, hwp - hw), (0, 0)))

    grid = (n, hwp // thw)
    in_specs = [
        pl.BlockSpec((1, thw, k), lambda bi, hi: (bi, hi, 0)),
        pl.BlockSpec((1, 1, k), lambda bi, hi: (bi, 0, 0)),
        pl.BlockSpec((k, cout), lambda bi, hi: (0, 0)),
        pl.BlockSpec((1, cout), lambda bi, hi: (0, 0)),
    ]
    args = [x3, s3, w, b]
    kern = _conv_c_kernel
    extra_bytes = 0
    if residual is not None:
        in_specs.append(pl.BlockSpec((1, thw, cout), lambda bi, hi: (bi, hi, 0)))
        args.append(residual)
        kern = _conv_c_res_kernel
        extra_bytes = n * hwp * cout * 2

    cost = pl.CostEstimate(
        flops=int(2 * n * hwp * k * cout),
        transcendentals=0,
        bytes_accessed=int(n * hwp * k * 2 + n * k * 2 + k * cout * 2 + cout * 4
                           + n * hwp * cout * 2 + extra_bytes),
    )
    out = pl.pallas_call(
        kern,
        out_shape=jax.ShapeDtypeStruct((n, hwp, cout), out_dtype),
        grid=grid,
        in_specs=in_specs,
        out_specs=pl.BlockSpec((1, thw, cout), lambda bi, hi: (bi, hi, 0)),
        compiler_params=pltpu.CompilerParams(
            dimension_semantics=("parallel", "parallel")),
        cost_estimate=cost,
    )(*args)
    return out[:, :hw, :] if hwp != hw else out


# ----------------------------------------------------------------------------
# Parameter preparation (BN folded into weights, padding, group chunking)
# ----------------------------------------------------------------------------
def make_block_params(key, width_in, width_out, group_width, bottleneck_multiplier,
                      se_ratio):
    # TODO(synk): birder's regnet_z BottleneckTransform may derive the bottleneck
    # width from width_in (inverted bottleneck); torchvision convention
    # (width_out * bottleneck_multiplier, SE squeeze from width_in) is used here.
    w_b = int(round(width_out * bottleneck_multiplier))
    g = w_b // group_width
    cpg = w_b // g
    c_se = int(round(se_ratio * width_in))

    cin_p = _round_up(width_in, LANE)
    wb_p = _round_up(w_b, LANE)
    cout_p = _round_up(width_out, LANE)

    # Group chunking for the 3x3 grouped conv: pack floor(128/cpg) groups per
    # chunk so the output lane dim is 128-dense.
    if LANE % cpg == 0:
        gpb = min(g, LANE // cpg)
    else:
        # TODO(synk): group widths not dividing 128 fall back to a single
        # block-diagonal chunk.
        gpb = g
    n_chunks = _cdiv(g, gpb)
    g_pad = n_chunks * gpb
    cw_in = gpb * cpg
    cw_out = cw_in if n_chunks > 1 else _round_up(cw_in, LANE)
    c_b_in = g_pad * cpg

    keys = jax.random.split(key, 10)

    def bn(k, c, eps=1e-5):
        k1, k2, k3, k4 = jax.random.split(k, 4)
        gamma = 1.0 + 0.1 * jax.random.normal(k1, (c,), jnp.float32)
        beta = 0.1 * jax.random.normal(k2, (c,), jnp.float32)
        mean = 0.1 * jax.random.normal(k3, (c,), jnp.float32)
        var = jax.random.uniform(k4, (c,), jnp.float32, 0.5, 1.5)
        scale = gamma / jnp.sqrt(var + eps)
        bias = beta - mean * scale
        return scale, bias

    # conv a: 1x1 --------------------------------------------------------
    a_w = 0.3 * jax.random.normal(keys[0], (width_in, w_b), jnp.float32) / math.sqrt(width_in)
    a_scale, a_bias = bn(keys[1], w_b)
    a_wf = a_w * a_scale[None, :]                                  # fold BN scale
    a_w_p = jnp.zeros((cin_p, wb_p), jnp.float32).at[:width_in, :w_b].set(a_wf)
    a_w_p = a_w_p.astype(jnp.bfloat16)
    a_b_p = jnp.zeros((1, wb_p), jnp.float32).at[0, :w_b].set(a_bias)

    # conv b: 3x3 grouped --------------------------------------------------
    w_grp = 0.3 * jax.random.normal(keys[2], (3, 3, g, cpg, cpg), jnp.float32) / math.sqrt(9 * cpg)
    b_scale, b_bias = bn(keys[3], w_b)
    wgf = w_grp * b_scale.reshape(1, 1, g, 1, cpg)                 # fold BN scale
    bw = jnp.zeros((n_chunks * 9, cw_in, cw_out), jnp.float32)
    bb = jnp.zeros((n_chunks, 1, cw_out), jnp.float32)
    for c in range(n_chunks):
        for gl in range(gpb):
            gi = c * gpb + gl
            if gi >= g:
                continue
            for t in range(9):
                ky, kx = divmod(t, 3)
                bw = bw.at[c * 9 + t,
                           gl * cpg:(gl + 1) * cpg,
                           gl * cpg:(gl + 1) * cpg].set(wgf[ky, kx, gi])
            bb = bb.at[c, 0, gl * cpg:(gl + 1) * cpg].set(b_bias[gi * cpg:(gi + 1) * cpg])
    bw = bw.astype(jnp.bfloat16)

    # SE -------------------------------------------------------------------
    se_w1 = jax.random.normal(keys[4], (w_b, c_se), jnp.float32) / math.sqrt(w_b)
    se_b1 = 0.1 * jax.random.normal(keys[5], (c_se,), jnp.float32)
    se_w2 = jax.random.normal(keys[6], (c_se, w_b), jnp.float32) / math.sqrt(c_se)
    se_b2 = 0.1 * jax.random.normal(keys[7], (w_b,), jnp.float32)

    # conv c: 1x1 (linear) ---------------------------------------------------
    c_w = 0.3 * jax.random.normal(keys[8], (w_b, width_out), jnp.float32) / math.sqrt(w_b)
    c_scale, c_bias = bn(keys[9], width_out)
    c_wf = c_w * c_scale[None, :]
    c_w_p = jnp.zeros((wb_p, cout_p), jnp.float32).at[:w_b, :width_out].set(c_wf)
    c_w_p = c_w_p.astype(jnp.bfloat16)
    c_b_p = jnp.zeros((1, cout_p), jnp.float32).at[0, :width_out].set(c_bias)

    meta = dict(width_in=width_in, width_out=width_out, w_b=w_b, g=g, cpg=cpg,
                gpb=gpb, n_chunks=n_chunks, cw_in=cw_in, cw_out=cw_out,
                c_b_in=c_b_in, cin_p=cin_p, wb_p=wb_p, cout_p=cout_p)
    ref = dict(a_w=a_wf, a_bias=a_bias, b_w=wgf, b_bias=b_bias,
               se_w1=se_w1, se_b1=se_b1, se_w2=se_w2, se_b2=se_b2,
               c_w=c_wf, c_bias=c_bias)

    return dict(a_w=a_w_p, a_bias=a_b_p, b_w=bw, b_bias=bb,
                se_w1=se_w1, se_b1=se_b1, se_w2=se_w2, se_b2=se_b2,
                c_w=c_w_p, c_bias=c_b_p, meta=meta, ref=ref)


# ----------------------------------------------------------------------------
# Forward pass (AnyStage)
# ----------------------------------------------------------------------------
def res_bottleneck_block(x, p, stride, shortcut):
    # x: (N, H, W, cin_p) bf16, channel-padded to 128 lanes.
    meta = p["meta"]
    n, h, w, cin_p = x.shape
    wb_p, w_b, c_b_in = meta["wb_p"], meta["w_b"], meta["c_b_in"]

    # conv a: 1x1 + (folded BN) + SiLU
    h1 = matmul_bias_act(x.reshape(n * h * w, cin_p), p["a_w"], p["a_bias"], act=True)
    h1 = h1.reshape(n, h, w, wb_p)[..., :w_b]
    if c_b_in != w_b:
        h1 = jnp.pad(h1, ((0, 0), (0, 0), (0, 0), (0, c_b_in - w_b)))

    # conv b: 3x3 grouped (stride) + (folded BN) + SiLU, group-chunked
    h2_raw, (ho, wo) = grouped_conv3x3(h1, p["b_w"], p["b_bias"], stride, meta)
    m2 = n * ho * wo
    nc, cw_in, cw_out = meta["n_chunks"], meta["cw_in"], meta["cw_out"]
    h2 = h2_raw.reshape(m2, nc, cw_out)[:, :, :cw_in].reshape(m2, nc * cw_in)[:, :w_b]
    h2 = h2.reshape(n, ho * wo, w_b)

    # SE: global pool + two tiny FCs in plain JAX (f32); scale fused into conv c
    mpool = jnp.mean(h2.astype(jnp.float32), axis=1)               # (N, w_b)
    hse = mpool @ p["se_w1"] + p["se_b1"]
    hse = hse * jax.nn.sigmoid(hse)                                # SiLU
    s = jax.nn.sigmoid(hse @ p["se_w2"] + p["se_b2"])              # (N, w_b)

    h2p = jnp.pad(h2, ((0, 0), (0, 0), (0, wb_p - w_b)))
    sp = jnp.pad(s, ((0, 0), (0, wb_p - w_b))).reshape(n, 1, wb_p).astype(jnp.bfloat16)

    # conv c: 1x1 + (folded BN), SE prescale + residual fused in-kernel
    res = x.reshape(n, h * w, cin_p) if shortcut else None
    out = conv_c_se(h2p, sp, p["c_w"], p["c_bias"], residual=res)
    return out.reshape(n, ho, wo, meta["cout_p"])


def any_stage_forward(x_nchw, params, stride):
    x = jnp.transpose(x_nchw, (0, 2, 3, 1))                        # NCHW -> NHWC
    cin_p = params[0]["meta"]["cin_p"]
    x = jnp.pad(x, ((0, 0), (0, 0), (0, 0), (0, cin_p - x.shape[-1]))).astype(jnp.bfloat16)
    for i, p in enumerate(params):
        cur_stride = stride if i == 0 else (1, 1)
        m = p["meta"]
        shortcut = (m["width_in"] == m["width_out"]) and cur_stride == (1, 1)
        x = res_bottleneck_block(x, p, cur_stride, shortcut)
    width_out = params[-1]["meta"]["width_out"]
    x = x[..., :width_out].astype(jnp.float32)
    return jnp.transpose(x, (0, 3, 1, 2))                          # NHWC -> NCHW


# ----------------------------------------------------------------------------
# Pure-JAX reference (same math / same bf16 casts) for validation
# ----------------------------------------------------------------------------
def _ref_block(x_bf, r, meta, stride, shortcut):
    n, h, w, _ = x_bf.shape
    cin, w_b, g, cpg = meta["width_in"], meta["w_b"], meta["g"], meta["cpg"]

    def silu(v):
        return v * jax.nn.sigmoid(v)

    h1 = silu(jnp.dot(x_bf.reshape(-1, cin), r["a_w"].astype(jnp.bfloat16),
                      preferred_element_type=jnp.float32) + r["a_bias"])
    h1 = h1.astype(jnp.bfloat16).reshape(n, h, w, w_b)

    wconv = jnp.transpose(r["b_w"], (0, 1, 3, 2, 4)).reshape(3, 3, cpg, w_b)
    conv = jax.lax.conv_general_dilated(
        h1, wconv.astype(jnp.bfloat16), window_strides=stride, padding=((1, 1), (1, 1)),
        dimension_numbers=("NHWC", "HWIO", "NHWC"), feature_group_count=g,
        preferred_element_type=jnp.float32)
    h2 = silu(conv + r["b_bias"]).astype(jnp.bfloat16)

    mpool = jnp.mean(h2.astype(jnp.float32), axis=(1, 2))
    hse = mpool @ r["se_w1"] + r["se_b1"]
    hse = hse * jax.nn.sigmoid(hse)
    s = jax.nn.sigmoid(hse @ r["se_w2"] + r["se_b2"]).astype(jnp.bfloat16)

    xs = h2 * s[:, None, None, :]
    out = jnp.dot(xs.reshape(-1, w_b), r["c_w"].astype(jnp.bfloat16),
                  preferred_element_type=jnp.float32) + r["c_bias"]
    if shortcut:
        out = out + x_bf.reshape(-1, cin).astype(jnp.float32)
    ho, wo = h2.shape[1], h2.shape[2]
    return out.astype(jnp.bfloat16).reshape(n, ho, wo, -1)


# ----------------------------------------------------------------------------
if __name__ == "__main__":
    key = jax.random.PRNGKey(0)
    width_in, width_out = 8, 16
    stride, depth = (2, 2), 2
    group_width, bottleneck_multiplier, se_ratio = 4, 1.0, 0.25

    k_x, k_p = jax.random.split(key)
    x = jax.random.normal(k_x, (2, width_in, 16, 16), jnp.float32)   # NCHW

    pkeys = jax.random.split(k_p, depth)
    params = []
    for i in range(depth):
        in_ch = width_in if i == 0 else width_out
        params.append(make_block_params(pkeys[i], in_ch, width_out,
                                        group_width, bottleneck_multiplier, se_ratio))

    out = any_stage_forward(x, params, stride)
    out = jax.block_until_ready(out)

    # Validate against a pure-JAX reference with identical math (bf16 matmul
    # operands, f32 accumulation, bf16 inter-layer activations).
    xr = jnp.transpose(x, (0, 2, 3, 1)).astype(jnp.bfloat16)
    for i, p in enumerate(params):
        cs = stride if i == 0 else (1, 1)
        m = p["meta"]
        sc = (m["width_in"] == m["width_out"]) and cs == (1, 1)
        xr = _ref_block(xr, p["ref"], m, cs, sc)
    ref = jnp.transpose(xr.astype(jnp.float32), (0, 3, 1, 2))

    assert out.shape == (2, width_out, 8, 8), out.shape
    assert bool(jnp.all(jnp.isfinite(out)))
    max_err = float(jnp.max(jnp.abs(out - ref)))
    assert jnp.allclose(out, ref, atol=2e-2, rtol=2e-2), max_err
    print("KERNEL_OK")
</pallas_src>

<mosaic_0001>
module attributes {stable_mosaic.version = 11 : i64} {
  func.func @_mm_bias_act_kernel(%arg0: i32, %arg1: memref<256x128xbf16, #tpu.memory_space<vmem>>, %arg2: memref<128x128xbf16, #tpu.memory_space<vmem>>, %arg3: memref<1x128xf32, #tpu.memory_space<vmem>>, %arg4: memref<256x128xbf16, #tpu.memory_space<vmem>>) attributes {dimension_semantics = [#tpu.dimension_semantics<parallel>], iteration_bounds = array<i64: 2>, scalar_prefetch = 0 : i64, scratch_operands = 0 : i64, tpu.core_type = #tpu.core_type<tc>, window_params = [{transform_indices = @transform_0, window_bounds = array<i64: 256, 128>}, {pipeline_mode = #tpu.pipeline_mode<synchronous>, transform_indices = @transform_1, window_bounds = array<i64: 128, 128>}, {pipeline_mode = #tpu.pipeline_mode<synchronous>, transform_indices = @transform_2, window_bounds = array<i64: 1, 128>}, {transform_indices = @transform_3, window_bounds = array<i64: 256, 128>}]} {
    %c0 = arith.constant 0 : index
    %c0_0 = arith.constant 0 : index
    %0 = vector.load %arg1[%c0, %c0_0] : memref<256x128xbf16, #tpu.memory_space<vmem>>, vector<256x128xbf16>
    %c0_1 = arith.constant 0 : index
    %c0_2 = arith.constant 0 : index
    %1 = vector.load %arg2[%c0_1, %c0_2] : memref<128x128xbf16, #tpu.memory_space<vmem>>, vector<128x128xbf16>
    %cst = arith.constant dense<0.000000e+00> : vector<256x128xf32>
    %2 = tpu.matmul %0, %1, %cst {dimension_numbers = #tpu.dot_dimension_numbers<[1], [0], [0], [1], [0, 0, 1, 1], [], []>} : vector<256x128xbf16>, vector<128x128xbf16>, vector<256x128xf32> -> vector<256x128xf32>
    %c0_3 = arith.constant 0 : index
    %c0_4 = arith.constant 0 : index
    %3 = vector.load %arg3[%c0_3, %c0_4] : memref<1x128xf32, #tpu.memory_space<vmem>>, vector<1x128xf32>
    %4 = vector.broadcast %3 : vector<1x128xf32> to vector<256x128xf32>
    %5 = arith.addf %2, %4 : vector<256x128xf32>
    %6 = arith.negf %5 : vector<256x128xf32>
    %7 = math.exp %6 : vector<256x128xf32>
    %cst_5 = arith.constant 1.000000e+00 : f32
    %8 = vector.broadcast %cst_5 : f32 to vector<256x128xf32>
    %9 = arith.addf %8, %7 : vector<256x128xf32>
    %10 = arith.divf %8, %9 : vector<256x128xf32>
    %11 = arith.mulf %5, %10 : vector<256x128xf32>
    %12 = arith.truncf %11 : vector<256x128xf32> to vector<256x128xbf16>
    %c0_6 = arith.constant 0 : index
    %c0_7 = arith.constant 0 : index
    %13 = vector.load %arg4[%c0_6, %c0_7] : memref<256x128xbf16, #tpu.memory_space<vmem>>, vector<256x128xbf16>
    tpu.vector_store %arg4[%c0_6, %c0_7], %12 {strides = array<i32>} : memref<256x128xbf16, #tpu.memory_space<vmem>>, vector<256x128xbf16>,
    return
  }
  func.func @transform_0(%arg0: i32) -> (i32, i32) {
    %c0_i32 = arith.constant 0 : i32
    %c0_i32_0 = arith.constant 0 : i32
    return %arg0, %c0_i32 : i32, i32
  }
  func.func @transform_1(%arg0: i32) -> (i32, i32) {
    %c0_i32 = arith.constant 0 : i32
    %c0_i32_0 = arith.constant 0 : i32
    %c0_i32_1 = arith.constant 0 : i32
    return %c0_i32, %c0_i32_0 : i32, i32
  }
  func.func @transform_2(%arg0: i32) -> (i32, i32) {
    %c0_i32 = arith.constant 0 : i32
    %c0_i32_0 = arith.constant 0 : i32
    %c0_i32_1 = arith.constant 0 : i32
    return %c0_i32, %c0_i32_0 : i32, i32
  }
  func.func @transform_3(%arg0: i32) -> (i32, i32) {
    %c0_i32 = arith.constant 0 : i32
    %c0_i32_0 = arith.constant 0 : i32
    return %arg0, %c0_i32 : i32, i32
  }
}

</mosaic_0001>

<bundles_post_ra>
// kernel: tpu_custom_call.1
= control target key start
LH: loop header
LB: loop body
LE: loop exit
PB: predicated region body
PF: predicated region fallthrough
CT: control target
= control target key end

     0   :  { %8 = vsyncpa [#allocation3], 0  ;;  %s2123_s0 = inlined_call_operand.hbm [shape: bf16[512,128], index: 0, kind: input, shape index: {}]   ;;  %s2124_s1 = inlined_call_operand.hbm [shape: bf16[128,128], index: 1, kind: input, shape index: {}]   ;;  %s2125_s2 = inlined_call_operand.vmem [shape: f32[1,128], index: 2, kind: input, shape index: {}]   ;;  %s2126_s3 = inlined_call_operand.hbm [shape: bf16[512,128], index: 3, kind: output, shape index: {}]  }
   0x1   :  { %10 = vsyncpa [#allocation3 + $0x1], 0 }
   0x2   :  { %11 = vsyncpa [#allocation6], 0 }
   0x3   :  { %12 = vsyncpa [#allocation4], 0 }
   0x4   :  { %14 = vsyncpa [#allocation4 + $0x1], 0  ;;  %s1734_s12 = smov 0   ;;  %s1736_s13 = smov 0  }
   0x5   :  { %s1738_s14 = smov 0   ;;  %s1740_s15 = smov 0  }
   0x6 LB: > { %s1755_s16 = sadd.s32 4294967295, %s1705_s15   ;;  %s1048_s17 = sadd.s32 4294967294, %s1705_s15   ;;  %s1705_s15 = sphi %s1740_s15, %s2148_s15   ;;  %s1701_s14 = sphi %s1738_s14, %s2147_s14   ;;  %s1697_s13 = sphi %s1736_s13, %s2146_s13   ;;  %s1693_s12 = sphi %s1734_s12, %s2145_s12  }
   0x7   : > { %p40_p0 = scmp.ne.s32.totalorder %s1697_s13, %s1693_s12  ;;  %p2127_p1 = scmp.eq.s32.totalorder %s1755_s16, 0 }
   0x8   : > { %p112_p3 = scmp.eq.s32.totalorder %s1048_s17, 1  ;;  %p1049_p5 = scmp.ge.s32.totalorder %s1705_s15, 1 }
   0x9   : > { %p1764_p4 = por %p2127_p1, %p40_p0  ;;  %p119_p7 = scmp.lt.s32.totalorder %s1705_s15, 3 }
   0xa   : > { %p1769_p6 = por %p112_p3, %p40_p0  ;;  %s1707_s21 = smov [#allocation5]  }
   0xb   : > { %s2131_s18 = scalar_select %p1764_p4, 1, 0 }
   0xc   : > { %s2132_s19 = scalar_select %p1769_p6, 1, 0 }
   0xd   : > { %p1774_p8 = pnand %p1049_p5, %p119_p7  ;;  %s131_s22 = sshll.u32 %s1707_s21, 4  ;;  %s132_s22 = int_to_ptr.vmem [resolvable:$true] %s131_s22 }
   0xe   : > { %s1788_s24 = sadd.s32 1, %s1705_s15   ;;  %s27_s25 = sadd.s32 1, %s1701_s14 }
   0xf   : > { %s2133_s20 = scalar_select %p1774_p8, 1, 0 }
  0x10   : > { %p1378_p9 = pneg %p1774_p8  ;;  %s24_s26 = ssub.s32 %s1705_s15, %s1788_s24 }
  0x11   : > { %s1594_s27 = scalar_lea.vmem %s132_s22, 1024  ;;  %p1602_p5 = scmp.lt.s32.totalorder %s132_s22, %s132_s22 }
  0x12   : > { %p1783_p11 = pnand %p1378_p9, %p2127_p1  ;;  %p1595_p13 = scmp.ne.s32.totalorder %s132_s22, %s1594_s27 }
  0x13   : > { %p1603_p7 = scmp.lt.s32.totalorder %s1594_s27, %s1594_s27 }
  0x14   : > { %p1585_p12 = pneg %p1783_p11 }
  0x15   : > { %p1604_p10 = por %p1603_p7, %p1602_p5 }
  0x16   : > { %p1597_p0 = pnand %p1595_p13, %p1585_p12 }
  0x18   : > { %p1598_p3 = pneg %p1597_p0 }
  0x1a   : > { %p1605_p2 = pnand %p1604_p10, %p1598_p3 }
  0x1c   : > { %1608 = shalt.err (!%p1605_p2)
}
  0x1d   : > { %s1708_s28 = smov 64   ;;  %s1709_s29 = smov 4  }
  0x1e   : > { %1381 = dma.hbm_to_vmem [thread:$0]  (!%p1783_p11), %s2124_s1, 1024, %s132_s22, [#allocation6], %s1708_s28, %s1708_s28, %s1709_s29  }
  0x1f   : > { %p25_p2 = scmp.eq.s32.totalorder %s24_s26, 0  ;;  %p34_p9 = scmp.ne.s32.totalorder %s1701_s14, %s1697_s13 }
  0x20   : > { %p35_p10 = scmp.eq.s32.totalorder %s1705_s15, 0  ;;  %p1391_p12 = scmp.lt.s32.totalorder %s1705_s15, 2 }
  0x21   : > { %s1808_s5 = scalar_select %p25_p2, %s1701_s14, %s27_s25  }
  0x22   : > { %p36_p13 = por %p35_p10, %p34_p9  ;;  %p2135_p0 = scmp.eq.s32.totalorder %s1755_s16, 1 }
  0x23   : > { %s148_s7 = sand.u32 1, %s1701_s14   ;;  %s1153_s8 = sshll.u32 %s1705_s15, 11 }
  0x24   : > { %p1812_p3 = por %p2135_p0, %p34_p9  ;;  %s1052_s9 = sshll.u32 %s148_s7, 7 }
  0x25   : > { %s1821_s17 = scalar_lea.hbm %s2123_s0, %s1153_s8  ;;  %s152_s21 = scalar_lea.vmem [#allocation2], %s1052_s9 }
  0x26   : > { %s2136_s6 = scalar_select %p1812_p3, 1, 0 }
  0x27   : > { %s159_s22 = sshll.u32 %s152_s21, 4  ;;  %p1823_p11 = pnand %p1391_p12, %p36_p13  ;;  %s1827_s22 = int_to_ptr.vmem [resolvable:$true] %s159_s22 }
  0x28   : > { %s1829_s25 = scalar_lea.sflag [#allocation3], %s148_s7  ;;  %s1609_s26 = scalar_lea.hbm %s1821_s17, 2048 }
  0x29   : > { %p1610_p5 = scmp.ne.s32.totalorder %s1821_s17, %s1609_s26  ;;  %p1611_p7 = pneg %p1823_p11 }
  0x2a   : > { %s1614_s4 = scalar_lea.hbm %s2123_s0, 4096  ;;  %p1615_p10 = scmp.lt.s32.totalorder %s1821_s17, %s2123_s0 }
  0x2b   : > { %p1612_p2 = pnand %p1611_p7, %p1610_p5  ;;  %p1616_p12 = scmp.lt.s32.totalorder %s1614_s4, %s1609_s26 }
  0x2d   : > { %p1613_p9 = pneg %p1612_p2  ;;  %p1617_p13 = por %p1616_p12, %p1615_p10 }
  0x2f   : > { %p1618_p0 = pnand %p1617_p13, %p1613_p9 }
  0x31   : > { %1621 = shalt.err (!%p1618_p0)
}
  0x32   : > { %s1622_s7 = scalar_lea.vmem %s1827_s22, 2048  ;;  %s1710_s10 = smov [#allocation2]  }
  0x33   : > { %p1623_p1 = scmp.ne.s32.totalorder %s1827_s22, %s1622_s7  ;;  %s1627_s11 = sshll.u32 %s1710_s10, 4  ;;  %s1628_s11 = int_to_ptr.vmem [resolvable:$false] %s1627_s11 }
  0x34   : > { %s1629_s21 = scalar_lea.vmem %s1628_s11, 4096  ;;  %p1630_p2 = scmp.lt.s32.totalorder %s1827_s22, %s1628_s11 }
  0x35   : > { %p1625_p6 = pnand %p1623_p1, %p1611_p7  ;;  %p1631_p3 = scmp.lt.s32.totalorder %s1629_s21, %s1622_s7 }
  0x37   : > { %p1626_p5 = pneg %p1625_p6  ;;  %p1632_p4 = por %p1631_p3, %p1630_p2 }
  0x39   : > { %p1633_p8 = pnand %p1632_p4, %p1626_p5 }
  0x3b   : > { %1636 = shalt.err (!%p1633_p8)
}
  0x3c   : > { %1385 = dma.hbm_to_vmem [thread:$0]  (!%p1823_p11), %s1821_s17, 2048, %s1827_s22, %s1829_s25, %s1708_s28, %s1708_s28, %s1709_s29  }
  0x3d   : > { %p2138_p1 = scmp.ne.s32.totalorder %s2133_s20, 0 }
  0x3e   : > { %s1856_s26 = sand.u32 (!%p2138_p1), 1, %s1697_s13   ;;  %p2139_p4 = scmp.ne.s32.totalorder (!%p2138_p1), %s2131_s18, 0 }
  0x3f   : > { %171 = sbr.rel (%p2138_p1) target bundleno = 397 (0x18d), region = 32  ;;  %s1056_s27 = sshll.u32 (!%p2138_p1), %s1856_s26, 7 }
  0x40   : > { %s174_s30 = scalar_lea.sflag (!%p2138_p1), [#allocation3], %s1856_s26  ;;  %s1862_s23 = scalar_lea.vmem (!%p2138_p1), [#allocation2], %s1056_s27 }
  0x44   : > { %1680 = dma.done.wait (%p2139_p4), %s174_s30, 2048  }
  0x45   : > { %1682 = vsyncadd (%p2139_p4), %s174_s30, 4294965248  ;;  %p2140_p6 = scmp.eq.s32.totalorder %s1755_s16, 0 }
  0x47   : > { %1684 = dma.done.wait (%p2140_p6), [#allocation6], 1024   ;;  %p2141_p8 = pmov %p2140_p6 }
  0x48   : > { %v1431_v0 = vld [vmem:[#allocation5 + $0x38] sm:$0xff]   ;;  %v1432_v1 = vld [vmem:[#allocation5 + $0x30] sm:$0xff]   ;;  %v1433_v2 = vld [vmem:[#allocation5 + $0x28] sm:$0xff]   ;;  %s2019_s28 = scalar_lea.vmem [#allocation7], %s1056_s27  ;;  %s1186_s29 = sshll.u32 %s1755_s16, 11 }
  0x49   : > { %1686 = vsyncadd (%p2141_p8), [#allocation6], 4294966272  ;;  %1306 = vmatprep.subr.bf16.mxu0 %v1431_v0  ;;  %1354 = vmatprep.subr.bf16.mxu1 %v1431_v0  ;;  %v1434_v3 = vld [vmem:[#allocation5 + $0x20] sm:$0xff]   ;;  %v1435_v6 = vld [vmem:[#allocation5 + $0x18] sm:$0xff]   ;;  %s965_s17 = sshll.u32 %s2019_s28, 4  ;;  %s2075_s16 = scalar_lea.hbm %s2126_s3, %s1186_s29  ;;  %s2077_s17 = int_to_ptr.vmem [resolvable:$true] %s965_s17 }
  0x4a   : > { %1307 = vmatpush3.bf16.msra.mxu0 %v1431_v0  ;;  %1362 = vmatpush3.bf16.msra.mxu1 %v1431_v0  ;;  %v1439_v4 = vld [vmem:[%s1862_s23] sm:$0xff]   ;;  %v1436_v7 = vld [vmem:[#allocation5 + $0x10] sm:$0xff]   ;;  %v1437_v8 = vld [vmem:[#allocation5 + $0x8] sm:$0xff]   ;;  %s952_s4 = scalar_lea.sflag [#allocation4], %s1856_s26  ;;  %s1637_s8 = scalar_lea.vmem %s2077_s17, 2048 }
  0x4b   : > { %1308 = vmatprep.subr.bf16.mxu0 %v1432_v1  ;;  %1355 = vmatprep.subr.bf16.mxu1 %v1432_v1  ;;  %v1440_v5 = vld [vmem:[%s1862_s23 + $0x40] sm:$0xff]   ;;  %v1441_v10 = vld [vmem:[%s1862_s23 + $0x8] sm:$0xff]   ;;  %v1443_v12 = vld [vmem:[%s1862_s23 + $0x10] sm:$0xff]   ;;  %p1638_p3 = scmp.ne.s32.totalorder %s2077_s17, %s1637_s8  ;;  %p2142_p11 = scmp.ne.s32.totalorder %s2136_s6, 0 }
  0x4c   : > { %1322 = vmatprep.mubr.bf16.mxu0 %v1439_v4  ;;  %1338 = vmatprep.mubr.bf16.mxu1 %v1440_v5  ;;  %v1438_v9 = vld [vmem:[#allocation5] sm:$0xff]   ;;  %v1442_v11 = vld [vmem:[%s1862_s23 + $0x48] sm:$0xff]   ;;  %v1444_v13 = vld [vmem:[%s1862_s23 + $0x50] sm:$0xff]   ;;  %s1711_s9 = smov [#allocation7]  }
  0x4d   : > { %v1445_v14 = vld [vmem:[%s1862_s23 + $0x18] sm:$0xff]   ;;  %v1447_v16 = vld [vmem:[%s1862_s23 + $0x20] sm:$0xff]   ;;  %v1449_v18 = vld [vmem:[%s1862_s23 + $0x28] sm:$0xff]   ;;  %p1639_p7 = pnand %p1638_p3, %p2142_p11  ;;  %s1641_s7 = sshll.u32 %s1711_s9, 4  ;;  %s1642_s7 = int_to_ptr.vmem [resolvable:$false] %s1641_s7 }
  0x4e   : > { %1309 = vmatpush3.bf16.msra.mxu0 %v1432_v1  ;;  %1363 = vmatpush3.bf16.msra.mxu1 %v1432_v1  ;;  %v1446_v15 = vld [vmem:[%s1862_s23 + $0x58] sm:$0xff]   ;;  %v1448_v17 = vld [vmem:[%s1862_s23 + $0x60] sm:$0xff]   ;;  %v1450_v19 = vld [vmem:[%s1862_s23 + $0x68] sm:$0xff]   ;;  %s1643_s10 = scalar_lea.vmem %s1642_s7, 4096  ;;  %p1644_p10 = scmp.lt.s32.totalorder %s2077_s17, %s1642_s7 }
  0x4f   : > { %1310 = vmatprep.subr.bf16.mxu0 %v1433_v2  ;;  %1356 = vmatprep.subr.bf16.mxu1 %v1433_v2  ;;  %v1451_v20 = vld [vmem:[%s1862_s23 + $0x30] sm:$0xff]   ;;  %v1453_v22 = vld [vmem:[%s1862_s23 + $0x38] sm:$0xff]   ;;  %v1891_v24 = vld [vmem:[%s2125_s2] ss:$0 sm:$0xff]  ;;  %p1640_p9 = pneg %p1639_p7  ;;  %p1645_p12 = scmp.lt.s32.totalorder %s1643_s10, %s1637_s8 }
  0x50   : > { %v1452_v21 = vld [vmem:[%s1862_s23 + $0x70] sm:$0xff]   ;;  %v1454_v23 = vld [vmem:[%s1862_s23 + $0x78] sm:$0xff]  }
  0x51   : > { %p1646_p13 = por %p1645_p12, %p1644_p10 }
  0x52   : > { %1311 = vmatpush3.bf16.msra.mxu0 %v1433_v2  ;;  %1364 = vmatpush3.bf16.msra.mxu1 %v1433_v2 }
  0x53   : > { %1312 = vmatprep.subr.bf16.mxu0 %v1434_v3  ;;  %1357 = vmatprep.subr.bf16.mxu1 %v1434_v3  ;;  %p1647_p0 = pnand %p1646_p13, %p1640_p9 }
  0x56   : > { %1313 = vmatpush3.bf16.msra.mxu0 %v1434_v3  ;;  %1365 = vmatpush3.bf16.msra.mxu1 %v1434_v3 }
  0x57   : > { %1314 = vmatprep.subr.bf16.mxu0 %v1435_v6  ;;  %1358 = vmatprep.subr.bf16.mxu1 %v1435_v6 }
  0x5a   : > { %1315 = vmatpush3.bf16.msra.mxu0 %v1435_v6  ;;  %1366 = vmatpush3.bf16.msra.mxu1 %v1435_v6 }
  0x5b   : > { %1316 = vmatprep.subr.bf16.mxu0 %v1436_v7  ;;  %1359 = vmatprep.subr.bf16.mxu1 %v1436_v7 }
  0x5e   : > { %1317 = vmatpush3.bf16.msra.mxu0 %v1436_v7  ;;  %1367 = vmatpush3.bf16.msra.mxu1 %v1436_v7 }
  0x5f   : > { %1318 = vmatprep.subr.bf16.mxu0 %v1437_v8  ;;  %1360 = vmatprep.subr.bf16.mxu1 %v1437_v8 }
  0x62   : > { %1319 = vmatpush3.bf16.msra.mxu0 %v1437_v8  ;;  %1368 = vmatpush3.bf16.msra.mxu1 %v1437_v8 }
  0x63   : > { %1320 = vmatprep.subr.bf16.mxu0 %v1438_v9  ;;  %1361 = vmatprep.subr.bf16.mxu1 %v1438_v9 }
  0x66   : > { %1321 = vmatpush3.bf16.msra.mxu0 %v1438_v9  ;;  %1369 = vmatpush3.bf16.msra.mxu1 %v1438_v9 }
  0x69   : > { %1323 = vmatmul.mubr.bf16.vlgmr.msra.gmra.mxu0 %v1441_v10  ;;  %1339 = vmatmul.mubr.bf16.vlgmr.msra.gmra.mxu1 %v1442_v11 }
  0x6a   : > { %1326 = vmatprep.mubr.bf16.mxu0 %v1443_v12  ;;  %1342 = vmatprep.mubr.bf16.mxu1 %v1444_v13 }
  0x71   : > { %1327 = vmatmul.mubr.bf16.gmra.mxu0 %v1445_v14  ;;  %1343 = vmatmul.mubr.bf16.gmra.mxu1 %v1446_v15 }
  0x72   : > { %1330 = vmatprep.mubr.bf16.mxu0 %v1447_v16  ;;  %1346 = vmatprep.mubr.bf16.mxu1 %v1448_v17 }
  0x79   : > { %1331 = vmatmul.mubr.bf16.gmra.mxu0 %v1449_v18  ;;  %1347 = vmatmul.mubr.bf16.gmra.mxu1 %v1450_v19 }
  0x7a   : > { %1334 = vmatprep.mubr.bf16.mxu0 %v1451_v20  ;;  %1350 = vmatprep.mubr.bf16.mxu1 %v1452_v21 }
  0x81   : > { %1335 = vmatmul.mubr.bf16.gmra.mxu0 %v1453_v22  ;;  %1351 = vmatmul.mubr.bf16.gmra.mxu1 %v1454_v23 }
 0x129   : > { %v1324_v25 = vpop.f32.mrf.mxu0  ;;  %v1340_v26 = vpop.f32.mrf.mxu1 }
 0x12a   : > { %v1894_v27 = vadd.f32 %v1324_v25, %v1891_v24  ;;  %v1897_v28 = vadd.f32 %v1340_v26, %v1891_v24 }
 0x12b   : > { %v440_v29 = vpop.f32.mrf.mxu0  ;;  %v504_v30 = vpop.f32.mrf.mxu1 }
 0x12c   : > { %v1086_v31 = vmul.f32 -1.442695, %v1894_v27  ;;  %v1102_v32 = vmul.f32 -1.442695, %v1897_v28  ;;  %v1902_v33 = vadd.f32 %v1891_v24, %v440_v29  ;;  %v1905_v34 = vadd.f32 %v1891_v24, %v504_v30 }
 0x12d   : > { %v1325_v35 = vpop.f32.mrf.mxu0  ;;  %v1341_v36 = vpop.f32.mrf.mxu1 }
 0x12e   : > { %1455 = vpow2.f32 %v1086_v31  ;;  %v1084_v37 = vmul.f32 -1.442695, %v1902_v33  ;;  %v1100_v38 = vmul.f32 -1.442695, %v1905_v34  ;;  %v1910_v39 = vadd.f32 %v1325_v35, %v1891_v24 }
 0x12f   : > { %1457 = vpow2.f32 %v1102_v32  ;;  %v1913_v40 = vadd.f32 %v1341_v36, %v1891_v24  ;;  %v443_v41 = vpop.f32.mrf.mxu0  ;;  %v507_v42 = vpop.f32.mrf.mxu1 }
 0x130   : > { %1459 = vpow2.f32 %v1084_v37  ;;  %v1087_v43 = vmul.f32 -1.442695, %v1910_v39  ;;  %v1917_v44 = vadd.f32 %v1891_v24, %v443_v41  ;;  %v1920_v45 = vadd.f32 %v1891_v24, %v507_v42 }
 0x131   : > { %1461 = vpow2.f32 %v1100_v38  ;;  %v1103_v46 = vmul.f32 -1.442695, %v1913_v40  ;;  %v1328_v47 = vpop.f32.mrf.mxu0  ;;  %v1344_v48 = vpop.f32.mrf.mxu1 }
 0x132   : > { %1463 = vpow2.f32 %v1087_v43  ;;  %v1085_v49 = vmul.f32 -1.442695, %v1917_v44  ;;  %v1101_v50 = vmul.f32 -1.442695, %v1920_v45  ;;  %v1926_v51 = vadd.f32 %v1328_v47, %v1891_v24 }
 0x133   : > { %1465 = vpow2.f32 %v1103_v46  ;;  %v1929_v52 = vadd.f32 %v1344_v48, %v1891_v24  ;;  %v456_v53 = vpop.f32.mrf.mxu0  ;;  %v520_v54 = vpop.f32.mrf.mxu1 }
 0x134   : > { %1467 = vpow2.f32 %v1085_v49  ;;  %v1090_v55 = vmul.f32 -1.442695, %v1926_v51  ;;  %v1933_v56 = vadd.f32 %v1891_v24, %v456_v53  ;;  %v1936_v57 = vadd.f32 %v1891_v24, %v520_v54 }
 0x135   : > { %1469 = vpow2.f32 %v1101_v50  ;;  %v1106_v58 = vmul.f32 -1.442695, %v1929_v52  ;;  %v1329_v59 = vpop.f32.mrf.mxu0  ;;  %v1345_v60 = vpop.f32.mrf.mxu1 }
 0x136   : > { %1471 = vpow2.f32 %v1090_v55  ;;  %v1088_v61 = vmul.f32 -1.442695, %v1933_v56  ;;  %v1104_v62 = vmul.f32 -1.442695, %v1936_v57  ;;  %v1942_v63 = vadd.f32 %v1329_v59, %v1891_v24 }
 0x137   : > { %1473 = vpow2.f32 %v1106_v58  ;;  %v1945_v0 = vadd.f32 %v1345_v60, %v1891_v24  ;;  %v459_v1 = vpop.f32.mrf.mxu0  ;;  %v523_v2 = vpop.f32.mrf.mxu1 }
 0x138   : > { %1475 = vpow2.f32 %v1088_v61  ;;  %v1091_v3 = vmul.f32 -1.442695, %v1942_v63  ;;  %v1949_v4 = vadd.f32 %v1891_v24, %v459_v1  ;;  %v1952_v5 = vadd.f32 %v1891_v24, %v523_v2 }
 0x139   : > { %1477 = vpow2.f32 %v1104_v62  ;;  %v1107_v6 = vmul.f32 -1.442695, %v1945_v0  ;;  %v1332_v7 = vpop.f32.mrf.mxu0  ;;  %v1348_v8 = vpop.f32.mrf.mxu1 }
 0x13a   : > { %1479 = vpow2.f32 %v1091_v3  ;;  %v1089_v9 = vmul.f32 -1.442695, %v1949_v4  ;;  %v1105_v10 = vmul.f32 -1.442695, %v1952_v5  ;;  %v1958_v41 = vadd.f32 %v1332_v7, %v1891_v24 }
 0x13b   : > { %v1456_v11 = vpop.eup %1455  ;;  %1481 = vpow2.f32 %v1107_v6  ;;  %v472_v12 = vpop.f32.mrf.mxu0  ;;  %v1961_v53 = vadd.f32 %v1348_v8, %v1891_v24 }
 0x13c   : > { %v536_v13 = vpop.f32.mrf.mxu1  ;;  %v1458_v14 = vpop.eup %1457  ;;  %v665_v15 = vadd.f32 1.0, %v1456_v11  ;;  %1483 = vpow2.f32 %v1089_v9  ;;  %v1094_v59 = vmul.f32 -1.442695, %v1958_v41  ;;  %v1965_v60 = vadd.f32 %v1891_v24, %v472_v12 }
 0x13d   : > { %v1460_v16 = vpop.eup %1459  ;;  %v681_v17 = vadd.f32 1.0, %v1458_v14  ;;  %1485 = vpow2.f32 %v1105_v10  ;;  %v1333_v18 = vpop.f32.mrf.mxu0  ;;  %v1968_v1 = vadd.f32 %v1891_v24, %v536_v13 }
 0x13e   : > { %v1462_v19 = vpop.eup %1461  ;;  %1487 = vrcp.f32 %v665_v15  ;;  %v663_v20 = vadd.f32 1.0, %v1460_v16  ;;  %v1349_v21 = vpop.f32.mrf.mxu1  ;;  %v1971_v2 = vadd.f32 %v1333_v18, %v1891_v24 }
 0x13f   : > { %v1464_v22 = vpop.eup %1463  ;;  %1489 = vrcp.f32 %v681_v17  ;;  %v679_v23 = vadd.f32 1.0, %v1462_v19  ;;  %v475_v31 = vpop.f32.mrf.mxu0  ;;  %v1974_v7 = vadd.f32 %v1349_v21, %v1891_v24  ;;  %v1110_v17 = vmul.f32 -1.442695, %v1961_v53 }
 0x140   : > { %v1466_v25 = vpop.eup %1465  ;;  %1491 = vrcp.f32 %v663_v20  ;;  %v666_v26 = vadd.f32 1.0, %v1464_v22  ;;  %v539_v36 = vpop.f32.mrf.mxu1  ;;  %v1977_v8 = vadd.f32 %v1891_v24, %v475_v31  ;;  %v1092_v20 = vmul.f32 -1.442695, %v1965_v60 }
 0x141   : > { %v1468_v29 = vpop.eup %1467  ;;  %1493 = vrcp.f32 %v679_v23  ;;  %v682_v30 = vadd.f32 1.0, %v1466_v25  ;;  %v1336_v48 = vpop.f32.mrf.mxu0  ;;  %v1980_v12 = vadd.f32 %v1891_v24, %v539_v36  ;;  %v1108_v22 = vmul.f32 -1.442695, %v1968_v1 }
 0x142   : > { %v1470_v32 = vpop.eup %1469  ;;  %1495 = vrcp.f32 %v666_v26  ;;  %v664_v35 = vadd.f32 1.0, %v1468_v29  ;;  %v1352_v54 = vpop.f32.mrf.mxu1  ;;  %v1983_v13 = vadd.f32 %v1336_v48, %v1891_v24  ;;  %v1095_v23 = vmul.f32 -1.442695, %v1971_v2 }
 0x143   : > { %v1472_v37 = vpop.eup %1471  ;;  %1497 = vrcp.f32 %v682_v30  ;;  %v680_v38 = vadd.f32 1.0, %v1470_v32  ;;  %v488_v9 = vpop.f32.mrf.mxu0  ;;  %v1987_v18 = vadd.f32 %v1352_v54, %v1891_v24  ;;  %v1111_v25 = vmul.f32 -1.442695, %v1974_v7 }
 0x144   : > { %v1474_v42 = vpop.eup %1473  ;;  %1499 = vrcp.f32 %v664_v35  ;;  %v669_v43 = vadd.f32 1.0, %v1472_v37  ;;  %v552_v14 = vpop.f32.mrf.mxu1  ;;  %v1093_v30 = vmul.f32 -1.442695, %v1977_v8  ;;  %v1109_v31 = vmul.f32 -1.442695, %v1980_v12 }
 0x145   : > { %v1476_v46 = vpop.eup %1475  ;;  %1501 = vrcp.f32 %v680_v38  ;;  %v685_v47 = vadd.f32 1.0, %v1474_v42  ;;  %v1337_v26 = vpop.f32.mrf.mxu0  ;;  %v1098_v32 = vmul.f32 -1.442695, %v1983_v13  ;;  %v1114_v37 = vmul.f32 -1.442695, %v1987_v18 }
 0x146   : > { %v1478_v49 = vpop.eup %1477  ;;  %1503 = vrcp.f32 %v669_v43  ;;  %v667_v50 = vadd.f32 1.0, %v1476_v46  ;;  %v1353_v35 = vpop.f32.mrf.mxu1  ;;  %v1998_v38 = vadd.f32 %v1891_v24, %v488_v9  ;;  %v2001_v42 = vadd.f32 %v1891_v24, %v552_v14 }
 0x147   : > { %v1480_v55 = vpop.eup %1479  ;;  %1505 = vrcp.f32 %v685_v47  ;;  %v683_v58 = vadd.f32 1.0, %v1478_v49  ;;  %v2006_v48 = vadd.f32 %v1337_v26, %v1891_v24 }
 0x148   : > { %v1482_v61 = vpop.eup %1481  ;;  %1507 = vrcp.f32 %v667_v50  ;;  %v670_v62 = vadd.f32 1.0, %v1480_v55  ;;  %v2011_v55 = vadd.f32 %v1353_v35, %v1891_v24 }
 0x149   : > { %v1484_v3 = vpop.eup %1483  ;;  %1509 = vrcp.f32 %v683_v58  ;;  %v686_v6 = vadd.f32 1.0, %v1482_v61  ;;  %v491_v58 = vpop.f32.mrf.mxu0 }
 0x14a   : > { %v1486_v10 = vpop.eup %1485  ;;  %1511 = vrcp.f32 %v670_v62  ;;  %v668_v11 = vadd.f32 1.0, %v1484_v3  ;;  %v555_v62 = vpop.f32.mrf.mxu1 }
 0x14b   : > { %v1488_v15 = vpop.eup %1487  ;;  %1513 = vrcp.f32 %v686_v6  ;;  %v684_v16 = vadd.f32 1.0, %v1486_v10  ;;  %v2024_v10 = vadd.f32 %v1891_v24, %v491_v58  ;;  %v2029_v14 = vadd.f32 %v1891_v24, %v555_v62 }
 0x14c   : > { %v1490_v19 = vpop.eup %1489  ;;  %1515 = vrcp.f32 %v668_v11  ;;  %v761_v46 = vmul.f32 %v1488_v15, %v1894_v27  ;;  %v1112_v11 = vmul.f32 -1.442695, %v2001_v42 }
 0x14d   : > { %v1492_v21 = vpop.eup %1491  ;;  %1517 = vrcp.f32 %v684_v16  ;;  %v777_v50 = vmul.f32 %v1490_v19, %v1897_v28  ;;  %v1099_v16 = vmul.f32 -1.442695, %v2006_v48  ;;  %v1115_v19 = vmul.f32 -1.442695, %v2011_v55 }
 0x14e   : > { %v1494_v29 = vpop.eup %1493  ;;  %1519 = vpow2.f32 %v1094_v59  ;;  %v759_v27 = vmul.f32 %v1492_v21, %v1902_v33 }
 0x14f   : > { %v1496_v36 = vpop.eup %1495  ;;  %1521 = vpow2.f32 %v1110_v17  ;;  %v775_v6 = vmul.f32 %v1494_v29, %v1905_v34  ;;  %v1113_v29 = vmul.f32 -1.442695, %v2029_v14 }
 0x150   : > { %v1498_v43 = vpop.eup %1497  ;;  %v762_v47 = vmul.f32 %v1496_v36, %v1910_v39  ;;  %1523 = vpow2.f32 %v1092_v20 }
 0x151   : > { %v1500_v49 = vpop.eup %1499  ;;  %v778_v54 = vmul.f32 %v1498_v43, %v1913_v40  ;;  %1525 = vpow2.f32 %v1108_v22 }
 0x152   : > { %v1502_v59 = vpop.eup %1501  ;;  %v1195_v61 = vpack.c.bf16 %v762_v47, %v761_v46  ;;  %v760_v39 = vmul.f32 %v1500_v49, %v1917_v44  ;;  %1527 = vpow2.f32 %v1095_v23  ;;  %v1096_v44 = vmul.f32 -1.442695, %v1998_v38 }
 0x153   : > { %v1504_v3 = vpop.eup %1503  ;;  %v1235_v28 = vpack.c.bf16 %v778_v54, %v777_v50  ;;  %v776_v40 = vmul.f32 %v1502_v59, %v1920_v45  ;;  %1529 = vpow2.f32 %v1111_v25  ;;  %v1097_v23 = vmul.f32 -1.442695, %v2024_v10 }
 0x154   : > { %v1506_v9 = vpop.eup %1505  ;;  %1267 = vst [vmem:[%s2019_s28 + $0x8] sm:$0xff] %v1195_v61   ;;  %v1190_v33 = vpack.c.bf16 %v760_v39, %v759_v27  ;;  %1531 = vpow2.f32 %v1093_v30  ;;  %v765_v21 = vmul.f32 %v1504_v3, %v1926_v51 }
 0x155   : > { %v1508_v34 = vpop.eup %1507  ;;  %1275 = vst [vmem:[%s2019_s28 + $0x48] sm:$0xff] %v1235_v28   ;;  %v1230_v45 = vpack.c.bf16 %v776_v40, %v775_v6  ;;  %1533 = vpow2.f32 %v1109_v31  ;;  %v781_v25 = vmul.f32 %v1506_v9, %v1929_v52 }
 0x156   : > { %v1510_v15 = vpop.eup %1509  ;;  %1191 = vst [vmem:[%s2019_s28] sm:$0xff] %v1190_v33   ;;  %1535 = vpow2.f32 %v1098_v32  ;;  %v763_v31 = vmul.f32 %v1508_v34, %v1933_v56 }
 0x157   : > { %v1512_v17 = vpop.eup %1511  ;;  %1274 = vst [vmem:[%s2019_s28 + $0x40] sm:$0xff] %v1230_v45   ;;  %1537 = vpow2.f32 %v1114_v37  ;;  %v779_v35 = vmul.f32 %v1510_v15, %v1936_v57 }
 0x158   : > { %v1514_v20 = vpop.eup %1513  ;;  %v766_v22 = vmul.f32 %v1512_v17, %v1942_v63  ;;  %1539 = vpow2.f32 %v1096_v44 }
 0x159   : > { %v1516_v24 = vpop.eup %1515  ;;  %v782_v26 = vmul.f32 %v1514_v20, %v1945_v0  ;;  %1541 = vpow2.f32 %v1112_v11 }
 0x15a   : > { %v1518_v30 = vpop.eup %1517  ;;  %v1205_v32 = vpack.c.bf16 %v766_v22, %v765_v21  ;;  %v764_v51 = vmul.f32 %v1516_v24, %v1949_v4  ;;  %1543 = vpow2.f32 %v1099_v16 }
 0x15b   : > { %v1520_v63 = vpop.eup %1519  ;;  %v1245_v36 = vpack.c.bf16 %v782_v26, %v781_v25  ;;  %v780_v52 = vmul.f32 %v1518_v30, %v1952_v5  ;;  %1545 = vpow2.f32 %v1115_v19 }
 0x15c   : > { %v1522_v0 = vpop.eup %1521  ;;  %1269 = vst [vmem:[%s2019_s28 + $0x18] sm:$0xff] %v1205_v32   ;;  %v1200_v37 = vpack.c.bf16 %v764_v51, %v763_v31  ;;  %v673_v43 = vadd.f32 1.0, %v1520_v63  ;;  %1547 = vpow2.f32 %v1097_v23 }
 0x15d   : > { %v1524_v46 = vpop.eup %1523  ;;  %1277 = vst [vmem:[%s2019_s28 + $0x58] sm:$0xff] %v1245_v36   ;;  %v1240_v56 = vpack.c.bf16 %v780_v52, %v779_v35  ;;  %v689_v47 = vadd.f32 1.0, %v1522_v0  ;;  %1549 = vpow2.f32 %v1113_v29 }
 0x15e   : > { %v1526_v4 = vpop.eup %1525  ;;  %1268 = vst [vmem:[%s2019_s28 + $0x10] sm:$0xff] %v1200_v37   ;;  %1551 = vrcp.f32 %v673_v43  ;;  %v671_v49 = vadd.f32 1.0, %v1524_v46 }
 0x15f   : > { %v1528_v57 = vpop.eup %1527  ;;  %1276 = vst [vmem:[%s2019_s28 + $0x50] sm:$0xff] %v1240_v56   ;;  %1553 = vrcp.f32 %v689_v47  ;;  %v687_v5 = vadd.f32 1.0, %v1526_v4 }
 0x160   : > { %v1530_v50 = vpop.eup %1529  ;;  %1555 = vrcp.f32 %v671_v49  ;;  %v674_v54 = vadd.f32 1.0, %v1528_v57 }
 0x161   : > { %v1532_v58 = vpop.eup %1531  ;;  %1557 = vrcp.f32 %v687_v5  ;;  %v690_v59 = vadd.f32 1.0, %v1530_v50 }
 0x162   : > { %v1534_v27 = vpop.eup %1533  ;;  %1559 = vrcp.f32 %v674_v54  ;;  %v672_v61 = vadd.f32 1.0, %v1532_v58 }
 0x163   : > { %v1536_v39 = vpop.eup %1535  ;;  %1561 = vrcp.f32 %v690_v59  ;;  %v688_v62 = vadd.f32 1.0, %v1534_v27 }
 0x164   : > { %v1538_v3 = vpop.eup %1537  ;;  %1563 = vrcp.f32 %v672_v61  ;;  %v677_v6 = vadd.f32 1.0, %v1536_v39 }
 0x165   : > { %v1540_v28 = vpop.eup %1539  ;;  %1565 = vrcp.f32 %v688_v62  ;;  %v693_v40 = vadd.f32 1.0, %v1538_v3 }
 0x166   : > { %v1542_v9 = vpop.eup %1541  ;;  %1567 = vrcp.f32 %v677_v6  ;;  %v675_v33 = vadd.f32 1.0, %v1540_v28 }
 0x167   : > { %v1544_v44 = vpop.eup %1543  ;;  %1569 = vrcp.f32 %v693_v40  ;;  %v691_v34 = vadd.f32 1.0, %v1542_v9 }
 0x168   : > { %v1546_v45 = vpop.eup %1545  ;;  %1571 = vrcp.f32 %v675_v33  ;;  %v678_v11 = vadd.f32 1.0, %v1544_v44 }
 0x169   : > { %v1548_v15 = vpop.eup %1547  ;;  %1573 = vrcp.f32 %v691_v34  ;;  %v694_v16 = vadd.f32 1.0, %v1546_v45 }
 0x16a   : > { %v1550_v17 = vpop.eup %1549  ;;  %1575 = vrcp.f32 %v678_v11  ;;  %v676_v19 = vadd.f32 1.0, %v1548_v15 }
 0x16b   : > { %v1552_v20 = vpop.eup %1551  ;;  %1577 = vrcp.f32 %v694_v16  ;;  %v692_v21 = vadd.f32 1.0, %v1550_v17 }
 0x16c   : > { %v1554_v22 = vpop.eup %1553  ;;  %1579 = vrcp.f32 %v676_v19  ;;  %v769_v29 = vmul.f32 %v1552_v20, %v1958_v41 }
 0x16d   : > { %v1556_v23 = vpop.eup %1555  ;;  %1581 = vrcp.f32 %v692_v21  ;;  %v785_v32 = vmul.f32 %v1554_v22, %v1961_v53 }
 0x16e   : > { %v1558_v24 = vpop.eup %1557  ;;  %v767_v35 = vmul.f32 %v1556_v23, %v1965_v60 }
 0x16f   : > { %v1560_v25 = vpop.eup %1559  ;;  %v783_v37 = vmul.f32 %v1558_v24, %v1968_v1 }
 0x170   : > { %v1562_v26 = vpop.eup %1561  ;;  %v770_v30 = vmul.f32 %v1560_v25, %v1971_v2 }
 0x171   : > { %v1564_v31 = vpop.eup %1563  ;;  %v786_v51 = vmul.f32 %v1562_v26, %v1974_v7 }
 0x172   : > { %v1566_v63 = vpop.eup %1565  ;;  %v1215_v36 = vpack.c.bf16 %v770_v30, %v769_v29  ;;  %v768_v52 = vmul.f32 %v1564_v31, %v1977_v8 }
 0x173   : > { %v1568_v0 = vpop.eup %1567  ;;  %v1255_v41 = vpack.c.bf16 %v786_v51, %v785_v32  ;;  %v784_v2 = vmul.f32 %v1566_v63, %v1980_v12 }
 0x174   : > { %v1570_v43 = vpop.eup %1569  ;;  %1271 = vst [vmem:[%s2019_s28 + $0x28] sm:$0xff] %v1215_v36   ;;  %v1210_v53 = vpack.c.bf16 %v768_v52, %v767_v35  ;;  %v773_v47 = vmul.f32 %v1568_v0, %v1983_v13 }
 0x175   : > { %v1572_v7 = vpop.eup %1571  ;;  %1279 = vst [vmem:[%s2019_s28 + $0x68] sm:$0xff] %v1255_v41   ;;  %v1250_v46 = vpack.c.bf16 %v784_v2, %v783_v37  ;;  %v789_v12 = vmul.f32 %v1570_v43, %v1987_v18 }
 0x176   : > { %v1574_v56 = vpop.eup %1573  ;;  %1270 = vst [vmem:[%s2019_s28 + $0x20] sm:$0xff] %v1210_v53   ;;  %v771_v5 = vmul.f32 %v1572_v7, %v1998_v38 }
 0x177   : > { %v1576_v60 = vpop.eup %1575  ;;  %1278 = vst [vmem:[%s2019_s28 + $0x60] sm:$0xff] %v1250_v46  }
 0x178   : > { %v1578_v8 = vpop.eup %1577  ;;  %v774_v1 = vmul.f32 %v1576_v60, %v2006_v48  ;;  %v787_v48 = vmul.f32 %v1574_v56, %v2001_v42 }
 0x179   : > { %v1580_v4 = vpop.eup %1579  ;;  %v790_v49 = vmul.f32 %v1578_v8, %v2011_v55 }
 0x17a   : > { %v1582_v57 = vpop.eup %1581  ;;  %v1225_v50 = vpack.c.bf16 %v774_v1, %v773_v47  ;;  %v772_v13 = vmul.f32 %v1580_v4, %v2024_v10 }
 0x17b   : > { %v1265_v54 = vpack.c.bf16 %v790_v49, %v789_v12  ;;  %v788_v58 = vmul.f32 %v1582_v57, %v2029_v14 }
 0x17c   : > { %1273 = vst [vmem:[%s2019_s28 + $0x38] sm:$0xff] %v1225_v50   ;;  %v1220_v18 = vpack.c.bf16 %v772_v13, %v771_v5 }
 0x17d   : > { %1281 = vst [vmem:[%s2019_s28 + $0x78] sm:$0xff] %v1265_v54   ;;  %v1260_v38 = vpack.c.bf16 %v788_v58, %v787_v48 }
 0x17e   : > { %1272 = vst [vmem:[%s2019_s28 + $0x30] sm:$0xff] %v1220_v18  }
 0x17f   : > { %1280 = vst [vmem:[%s2019_s28 + $0x70] sm:$0xff] %v1260_v38  }
 0x180   : > { %1650 = shalt.err (!%p1647_p0)
}
 0x181   : > { %s1651_s11 = scalar_lea.hbm %s2075_s16, 2048  ;;  %s1655_s30 = scalar_lea.hbm %s2126_s3, 4096 }
 0x182   : > { %p1652_p5 = scmp.ne.s32.totalorder %s2075_s16, %s1651_s11  ;;  %p1656_p4 = scmp.lt.s32.totalorder %s2075_s16, %s2126_s3 }
 0x183   : > { %p1657_p6 = scmp.lt.s32.totalorder %s1655_s30, %s1651_s11 }
 0x184   : > { %p1653_p2 = pnand %p1652_p5, %p2142_p11 }
 0x185   : > { %p1658_p8 = por %p1657_p6, %p1656_p4 }
 0x186   : > { %p1654_p1 = pneg %p1653_p2 }
 0x188   : > { %p1659_p3 = pnand %p1658_p8, %p1654_p1 }
 0x18a   : > { %1662 = shalt.err (!%p1659_p3)
}
 0x18b   : > { %s1712_s20 = smov 64   ;;  %s1713_s28 = smov 4  }
 0x18c   : > { %1376 = dma.vmem_to_hbm [thread:$0]  (%p2142_p11), %s2077_s17, 2048, %s2075_s16, %s952_s4, %s1712_s20, %s1712_s20, %s1713_s28  }
 0x18d PF: > { %s980_s29 = sand.u32 1, %s1693_s12   ;;  %p2143_p7 = scmp.ne.s32.totalorder %s2132_s19, 0 }
 0x18e   : > { %p2144_p9 = scmp.ge.s32.totalorder %s1705_s15, 2  ;;  %s981_s22 = scalar_lea.sflag [#allocation4], %s980_s29 }
 0x190   : > { %p1387_p10 = pnand %p2144_p9, %p2143_p7 }
 0x192   : > { %p1388_p12 = pneg %p1387_p10 }
 0x194   : > { %1688 = dma.done.wait (%p1388_p12), %s981_s22, 2048  }
 0x195   : > { %1690 = vsyncadd (%p1388_p12), %s981_s22, 4294965248  ;;  %p17_p13 = scmp.ge.s32.totalorder %s1788_s24, 4   ;;  %s2145_s12 = smov %s1697_s13 }
 0x196   : > { %s2146_s13 = smov %s1701_s14  ;;  %s2147_s14 = smov %s1808_s5 }
 0x197   : > { %s2148_s15 = smov %s1788_s24  ;;  %19 = sbr.rel (!%p17_p13) target bundleno = 6 (0x6), region = 81 }
 0x19c   :  { %986 = vsyncpa [#allocation3], 1 }
 0x19d   :  { %988 = vsyncpa [#allocation3 + $0x1], 1 }
 0x19e   :  { %989 = vsyncpa [#allocation6], 1 }
 0x19f   :  { %990 = vsyncpa [#allocation4], 1 }
 0x1a0   :  { %992 = vsyncpa [#allocation4 + $0x1], 1 }

</bundles_post_ra>
